<compile_context>
chip_gen: v6e
topology: v6e:2x2x1
jax: 0.10.0
libtpu: 0.0.40
codegen_flags: <defaults>
</compile_context>

<pallas_src>
import functools

import jax
import jax.numpy as jnp
from jax.experimental import pallas as pl
from jax.experimental.pallas import tpu as pltpu


def _gelu_tanh(x):
    # GELU with tanh approximation (matches nn.GELU(approximate='tanh')).
    c = jnp.sqrt(2.0 / jnp.pi).astype(x.dtype)
    return 0.5 * x * (1.0 + jnp.tanh(c * (x + 0.044715 * x * x * x)))


def _round_up(x, m):
    return (x + m - 1) // m * m


def _pick_fold(fan_in, fan_out):
    # Smallest token-folding factor that makes both the input and output
    # last dims a multiple of 128 lanes (1 = no folding, always correct).
    for f in (1, 2, 4, 8, 16):
        if (f * fan_in) % 128 == 0 and (f * fan_out) % 128 == 0:
            return f
    return 1


def mlp_kernel(x_ref, w1_ref, b1_ref, w2_ref, b2_ref, s_ref, st_ref, o_ref, *,
               eps, inv_fan_h, compute_dtype):
    # Folded layout: each row of the tile holds `fold` tokens' features side
    # by side.  No in-kernel relayout is needed because the weights are
    # block-diagonal-folded by the wrapper.
    x = x_ref[...]

    # fc1 on the MXU (K=fold*fan_in, N=fold*fan_h), f32 accumulation.
    h = jnp.dot(x.astype(compute_dtype), w1_ref[...],
                preferred_element_type=jnp.float32)
    h = h + b1_ref[...]                       # (1, F_h) broadcasts over rows

    # Activation in f32 (v5e has no bf16 VPU/EUP).
    # TODO(synk): optionally run GELU in bf16 on v6e/v7x (bf16 VPU/EUP).
    h = _gelu_tanh(h)

    # Per-token LayerNorm on the folded layout.  Segment (per-token) sums and
    # sums-of-squares go through the under-utilized MXU via the block
    # indicator matrix S, instead of XLU cross-lane reductions.  Stats stay
    # packed as (tm_f, fold).
    S = s_ref[...]                             # (F_h, fold), f32 0/1
    St = st_ref[...]                           # (fold, F_h)
    sums = jnp.dot(h, S, preferred_element_type=jnp.float32)
    sumsq = jnp.dot(h * h, S, preferred_element_type=jnp.float32)
    mean = sums * inv_fan_h
    var = jnp.maximum(sumsq * inv_fan_h - mean * mean, 0.0)
    inv = jax.lax.rsqrt(var + eps)             # (tm_f, fold) packed stats
    # Broadcast per-segment scale/shift back to lanes via S^T (MXU, tiny K).
    scale = jnp.dot(inv, St, preferred_element_type=jnp.float32)
    shift = jnp.dot(mean * inv, St, preferred_element_type=jnp.float32)
    hn = h * scale - shift
    # LayerNorm gamma/beta are folded into w2/b2 by the wrapper.

    # fc2 on the MXU (K=fold*fan_h, N=fold*fan_out).
    y = jnp.dot(hn.astype(compute_dtype), w2_ref[...],
                preferred_element_type=jnp.float32)
    y = y + b2_ref[...]

    # Output stays folded (lane-dense, unmasked vst); wrapper reshapes back.
    o_ref[...] = y.astype(o_ref.dtype)


def mlp_pallas(x, w1, b1, gamma, beta, w2, b2, *, eps=1e-5, tm=4096,
               compute_dtype=jnp.bfloat16):
    """x: (M, fan_in). w1: (fan_in, fan_h), w2: (fan_h, fan_out),
    b1/gamma/beta: (1, fan_h), b2: (1, fan_out). Returns (M, fan_out)."""
    M, fan_in = x.shape
    fan_h = w1.shape[1]
    fan_out = w2.shape[1]
    out_dtype = x.dtype

    # Fold LayerNorm affine into fc2 (one-time transform of tiny constants):
    #   (h*gamma + beta) @ w2 + b2 == h @ (gamma^T * w2) + (beta @ w2 + b2)
    w2f = gamma.reshape(fan_h, 1) * w2
    b2f = beta @ w2 + b2

    # Token-folding factor for lane-dense I/O (4 for fan_in = fan_out = 32).
    fold = _pick_fold(fan_in, fan_out)
    F_in, F_h, F_out = fold * fan_in, fold * fan_h, fold * fan_out

    # Block-diagonal folded weights + tiled biases (one-time constants).
    eye = jnp.eye(fold, dtype=jnp.float32)
    w1_bd = jnp.kron(eye, w1.astype(jnp.float32)).astype(compute_dtype)
    w2_bd = jnp.kron(eye, w2f.astype(jnp.float32)).astype(compute_dtype)
    b1_bd = jnp.tile(b1, (1, fold)).astype(jnp.float32)   # added in f32
    b2_bd = jnp.tile(b2f, (1, fold)).astype(jnp.float32)

    # Segment (per-token) indicator matrices for LayerNorm on the folded
    # layout: S[j, s] = 1 iff lane j belongs to token-segment s.
    seg_ids = jnp.repeat(jnp.arange(fold), fan_h)
    S = (seg_ids[:, None] == jnp.arange(fold)[None, :]).astype(jnp.float32)
    St = S.T

    # Tile sizing: large tm amortizes per-step overhead (VMEM has >30x
    # headroom even on v7x at tm=4096), clamp for small M so we don't
    # over-pad, and keep >= 2 grid steps when possible so v7x's two
    # TensorCores both get work.  tm is always a multiple of 8*fold.
    row_quant = 8 * fold
    min_steps = 2
    tm = max(row_quant, min(_round_up(tm, row_quant), _round_up(M, row_quant)))
    if M >= min_steps * row_quant:
        tm = min(tm, _round_up(pl.cdiv(M, min_steps), row_quant))

    # Tail handling: pad M up to a tile multiple, slice back afterwards.
    M_pad = _round_up(M, tm)
    if M_pad != M:
        x = jnp.pad(x, ((0, M_pad - M), (0, 0)))

    # Lane-dense folded view (pure row-major reshape, no HBM data movement).
    x_f = x.reshape(M_pad // fold, F_in)
    tm_f = tm // fold
    grid = (M_pad // tm,)

    kernel = functools.partial(
        mlp_kernel, eps=eps, inv_fan_h=1.0 / fan_h, compute_dtype=compute_dtype)

    # TODO(synk): on v5e, if a trace shows exposed DMA waits, add
    # pipeline_mode=pl.Buffered(3) on the x BlockSpec.
    out_f = pl.pallas_call(
        kernel,
        out_shape=jax.ShapeDtypeStruct((M_pad // fold, F_out), out_dtype),
        grid_spec=pltpu.PrefetchScalarGridSpec(
            num_scalar_prefetch=0,
            grid=grid,
            in_specs=[
                pl.BlockSpec((tm_f, F_in), lambda i: (i, 0)),   # x (folded)
                pl.BlockSpec((F_in, F_h), lambda i: (0, 0)),    # W1 blockdiag
                pl.BlockSpec((1, F_h), lambda i: (0, 0)),       # b1 tiled
                pl.BlockSpec((F_h, F_out), lambda i: (0, 0)),   # W2' blockdiag
                pl.BlockSpec((1, F_out), lambda i: (0, 0)),     # b2' tiled
                pl.BlockSpec((F_h, fold), lambda i: (0, 0)),    # S
                pl.BlockSpec((fold, F_h), lambda i: (0, 0)),    # S^T
            ],
            out_specs=pl.BlockSpec((tm_f, F_out), lambda i: (i, 0)),
        ),
        compiler_params=pltpu.CompilerParams(
            dimension_semantics=("parallel",)),   # shards grid across v7x's 2 TCs
    )(x_f, w1_bd, b1_bd, w2_bd, b2_bd, S, St)

    return out_f.reshape(M_pad, fan_out)[:M]


def mlp_reference(x, w1, b1, gamma, beta, w2, b2, eps=1e-5):
    h = x @ w1 + b1
    h = _gelu_tanh(h)
    mean = jnp.mean(h, axis=-1, keepdims=True)
    var = jnp.mean((h - mean) ** 2, axis=-1, keepdims=True)
    h = (h - mean) * jax.lax.rsqrt(var + eps)
    h = h * gamma + beta
    return h @ w2 + b2


def trunc_normal(key, shape, std=0.02, dtype=jnp.float32):
    # matches nn.init.trunc_normal_(mean=0, std=0.02, a=-2, b=2)
    return std * jax.random.truncated_normal(key, -2.0, 2.0, shape, dtype)


if __name__ == "__main__":
    # Small shapes consistent with the module's forward.
    batch, seq = 2, 64
    fan_in, fan_h, fan_out = 32, 64, 32

    key = jax.random.PRNGKey(0)
    kx, k1, k2, kb1, kb2 = jax.random.split(key, 5)

    x = jax.random.normal(kx, (batch, seq, fan_in), dtype=jnp.float32)

    # Parameters (deterministic in-script init; weights stored as (in, out)).
    w1 = trunc_normal(k1, (fan_in, fan_h))
    w2 = trunc_normal(k2, (fan_h, fan_out))
    b1 = jax.random.uniform(kb1, (1, fan_h), minval=-1.0, maxval=1.0) / jnp.sqrt(fan_in)
    b2 = jax.random.uniform(kb2, (1, fan_out), minval=-1.0, maxval=1.0) / jnp.sqrt(fan_h)
    # LayerNorm.reset_parameters(): weight=1, bias=0
    gamma = jnp.ones((1, fan_h), dtype=jnp.float32)
    beta = jnp.zeros((1, fan_h), dtype=jnp.float32)

    x2d = x.reshape(batch * seq, fan_in)
    ref = mlp_reference(x2d, w1, b1, gamma, beta, w2, b2)

    # Default path: bf16 matmul inputs, f32 accumulation + elementwise.
    out_bf16 = mlp_pallas(x2d, w1, b1, gamma, beta, w2, b2)
    jax.block_until_ready(out_bf16)
    assert out_bf16.shape == (batch * seq, fan_out)
    assert jnp.allclose(out_bf16, ref, atol=5e-2, rtol=5e-2), "bf16 path mismatch"

    # Full f32 path for a tight semantic check.
    out_f32 = mlp_pallas(x2d, w1, b1, gamma, beta, w2, b2,
                         compute_dtype=jnp.float32)
    jax.block_until_ready(out_f32)
    assert jnp.allclose(out_f32, ref, atol=1e-4, rtol=1e-4), "f32 path mismatch"

    # Also exercise the ragged-M (tail padding) path.
    x_tail = x2d[:100]
    out_tail = mlp_pallas(x_tail, w1, b1, gamma, beta, w2, b2,
                          compute_dtype=jnp.float32)
    jax.block_until_ready(out_tail)
    ref_tail = mlp_reference(x_tail, w1, b1, gamma, beta, w2, b2)
    assert out_tail.shape == (100, fan_out)
    assert jnp.allclose(out_tail, ref_tail, atol=1e-4, rtol=1e-4), "tail mismatch"

    print("KERNEL_OK")
</pallas_src>

<mosaic_0001>
module attributes {stable_mosaic.version = 11 : i64} {
  func.func @mlp_kernel(%arg0: i32, %arg1: memref<16x128xf32, #tpu.memory_space<vmem>>, %arg2: memref<128x256xbf16, #tpu.memory_space<vmem>>, %arg3: memref<1x256xf32, #tpu.memory_space<vmem>>, %arg4: memref<256x128xbf16, #tpu.memory_space<vmem>>, %arg5: memref<1x128xf32, #tpu.memory_space<vmem>>, %arg6: memref<256x4xf32, #tpu.memory_space<vmem>>, %arg7: memref<4x256xf32, #tpu.memory_space<vmem>>, %arg8: memref<16x128xf32, #tpu.memory_space<vmem>>) attributes {dimension_semantics = [#tpu.dimension_semantics<parallel>], iteration_bounds = array<i64: 2>, scalar_prefetch = 0 : i64, scratch_operands = 0 : i64, tpu.core_type = #tpu.core_type<tc>, window_params = [{transform_indices = @transform_0, window_bounds = array<i64: 16, 128>}, {pipeline_mode = #tpu.pipeline_mode<synchronous>, transform_indices = @transform_1, window_bounds = array<i64: 128, 256>}, {pipeline_mode = #tpu.pipeline_mode<synchronous>, transform_indices = @transform_2, window_bounds = array<i64: 1, 256>}, {pipeline_mode = #tpu.pipeline_mode<synchronous>, transform_indices = @transform_3, window_bounds = array<i64: 256, 128>}, {pipeline_mode = #tpu.pipeline_mode<synchronous>, transform_indices = @transform_4, window_bounds = array<i64: 1, 128>}, {pipeline_mode = #tpu.pipeline_mode<synchronous>, transform_indices = @transform_5, window_bounds = array<i64: 256, 4>}, {pipeline_mode = #tpu.pipeline_mode<synchronous>, transform_indices = @transform_6, window_bounds = array<i64: 4, 256>}, {transform_indices = @transform_7, window_bounds = array<i64: 16, 128>}]} {
    %c0 = arith.constant 0 : index
    %c0_0 = arith.constant 0 : index
    %0 = vector.load %arg1[%c0, %c0_0] : memref<16x128xf32, #tpu.memory_space<vmem>>, vector<16x128xf32>
    %1 = arith.truncf %0 : vector<16x128xf32> to vector<16x128xbf16>
    %c0_1 = arith.constant 0 : index
    %c0_2 = arith.constant 0 : index
    %2 = vector.load %arg2[%c0_1, %c0_2] : memref<128x256xbf16, #tpu.memory_space<vmem>>, vector<128x256xbf16>
    %cst = arith.constant dense<0.000000e+00> : vector<16x256xf32>
    %3 = tpu.matmul %1, %2, %cst {dimension_numbers = #tpu.dot_dimension_numbers<[1], [0], [0], [1], [0, 0, 1, 1], [], []>} : vector<16x128xbf16>, vector<128x256xbf16>, vector<16x256xf32> -> vector<16x256xf32>
    %c0_3 = arith.constant 0 : index
    %c0_4 = arith.constant 0 : index
    %4 = vector.load %arg3[%c0_3, %c0_4] : memref<1x256xf32, #tpu.memory_space<vmem>>, vector<1x256xf32>
    %5 = vector.broadcast %4 : vector<1x256xf32> to vector<16x256xf32>
    %6 = arith.addf %3, %5 : vector<16x256xf32>
    %cst_5 = arith.constant 0.636619746 : f32
    %7 = math.sqrt %cst_5 : f32
    %cst_6 = arith.constant 5.000000e-01 : f32
    %8 = vector.broadcast %cst_6 : f32 to vector<16x256xf32>
    %9 = arith.mulf %8, %6 : vector<16x256xf32>
    %cst_7 = arith.constant 4.471500e-02 : f32
    %10 = vector.broadcast %cst_7 : f32 to vector<16x256xf32>
    %11 = arith.mulf %10, %6 : vector<16x256xf32>
    %12 = arith.mulf %11, %6 : vector<16x256xf32>
    %13 = arith.mulf %12, %6 : vector<16x256xf32>
    %14 = arith.addf %6, %13 : vector<16x256xf32>
    %15 = vector.broadcast %7 : f32 to vector<16x256xf32>
    %16 = arith.mulf %15, %14 : vector<16x256xf32>
    %17 = math.tanh %16 : vector<16x256xf32>
    %cst_8 = arith.constant 1.000000e+00 : f32
    %18 = vector.broadcast %cst_8 : f32 to vector<16x256xf32>
    %19 = arith.addf %18, %17 : vector<16x256xf32>
    %20 = arith.mulf %9, %19 : vector<16x256xf32>
    %c0_9 = arith.constant 0 : index
    %c0_10 = arith.constant 0 : index
    %21 = vector.load %arg6[%c0_9, %c0_10] : memref<256x4xf32, #tpu.memory_space<vmem>>, vector<256x4xf32>
    %c0_11 = arith.constant 0 : index
    %c0_12 = arith.constant 0 : index
    %22 = vector.load %arg7[%c0_11, %c0_12] : memref<4x256xf32, #tpu.memory_space<vmem>>, vector<4x256xf32>
    %cst_13 = arith.constant dense<0.000000e+00> : vector<16x4xf32>
    %23 = tpu.matmul %20, %21, %cst_13 {dimension_numbers = #tpu.dot_dimension_numbers<[1], [0], [0], [1], [0, 0, 1, 1], [], []>} : vector<16x256xf32>, vector<256x4xf32>, vector<16x4xf32> -> vector<16x4xf32>
    %24 = arith.mulf %20, %20 : vector<16x256xf32>
    %cst_14 = arith.constant dense<0.000000e+00> : vector<16x4xf32>
    %25 = tpu.matmul %24, %21, %cst_14 {dimension_numbers = #tpu.dot_dimension_numbers<[1], [0], [0], [1], [0, 0, 1, 1], [], []>} : vector<16x256xf32>, vector<256x4xf32>, vector<16x4xf32> -> vector<16x4xf32>
    %cst_15 = arith.constant 1.562500e-02 : f32
    %26 = vector.broadcast %cst_15 : f32 to vector<16x4xf32>
    %27 = arith.mulf %23, %26 : vector<16x4xf32>
    %cst_16 = arith.constant 1.562500e-02 : f32
    %28 = vector.broadcast %cst_16 : f32 to vector<16x4xf32>
    %29 = arith.mulf %25, %28 : vector<16x4xf32>
    %30 = arith.mulf %27, %27 : vector<16x4xf32>
    %31 = arith.subf %29, %30 : vector<16x4xf32>
    %cst_17 = arith.constant 0.000000e+00 : f32
    %32 = vector.broadcast %cst_17 : f32 to vector<16x4xf32>
    %33 = arith.maximumf %31, %32 : vector<16x4xf32>
    %cst_18 = arith.constant 9.99999974E-6 : f32
    %34 = vector.broadcast %cst_18 : f32 to vector<16x4xf32>
    %35 = arith.addf %33, %34 : vector<16x4xf32>
    %36 = math.rsqrt %35 : vector<16x4xf32>
    %cst_19 = arith.constant dense<0.000000e+00> : vector<16x256xf32>
    %37 = tpu.matmul %36, %22, %cst_19 {dimension_numbers = #tpu.dot_dimension_numbers<[1], [0], [0], [1], [0, 0, 1, 1], [], []>} : vector<16x4xf32>, vector<4x256xf32>, vector<16x256xf32> -> vector<16x256xf32>
    %38 = arith.mulf %27, %36 : vector<16x4xf32>
    %cst_20 = arith.constant dense<0.000000e+00> : vector<16x256xf32>
    %39 = tpu.matmul %38, %22, %cst_20 {dimension_numbers = #tpu.dot_dimension_numbers<[1], [0], [0], [1], [0, 0, 1, 1], [], []>} : vector<16x4xf32>, vector<4x256xf32>, vector<16x256xf32> -> vector<16x256xf32>
    %40 = arith.mulf %20, %37 : vector<16x256xf32>
    %41 = arith.subf %40, %39 : vector<16x256xf32>
    %42 = arith.truncf %41 : vector<16x256xf32> to vector<16x256xbf16>
    %c0_21 = arith.constant 0 : index
    %c0_22 = arith.constant 0 : index
    %43 = vector.load %arg4[%c0_21, %c0_22] : memref<256x128xbf16, #tpu.memory_space<vmem>>, vector<256x128xbf16>
    %cst_23 = arith.constant dense<0.000000e+00> : vector<16x128xf32>
    %44 = tpu.matmul %42, %43, %cst_23 {dimension_numbers = #tpu.dot_dimension_numbers<[1], [0], [0], [1], [0, 0, 1, 1], [], []>} : vector<16x256xbf16>, vector<256x128xbf16>, vector<16x128xf32> -> vector<16x128xf32>
    %c0_24 = arith.constant 0 : index
    %c0_25 = arith.constant 0 : index
    %45 = vector.load %arg5[%c0_24, %c0_25] : memref<1x128xf32, #tpu.memory_space<vmem>>, vector<1x128xf32>
    %46 = vector.broadcast %45 : vector<1x128xf32> to vector<16x128xf32>
    %47 = arith.addf %44, %46 : vector<16x128xf32>
    %c0_26 = arith.constant 0 : index
    %c0_27 = arith.constant 0 : index
    %48 = vector.load %arg8[%c0_26, %c0_27] : memref<16x128xf32, #tpu.memory_space<vmem>>, vector<16x128xf32>
    tpu.vector_store %arg8[%c0_26, %c0_27], %47 {strides = array<i32>} : memref<16x128xf32, #tpu.memory_space<vmem>>, vector<16x128xf32>,
    return
  }
  func.func @transform_0(%arg0: i32) -> (i32, i32) {
    %c0_i32 = arith.constant 0 : i32
    %c0_i32_0 = arith.constant 0 : i32
    return %arg0, %c0_i32 : i32, i32
  }
  func.func @transform_1(%arg0: i32) -> (i32, i32) {
    %c0_i32 = arith.constant 0 : i32
    %c0_i32_0 = arith.constant 0 : i32
    %c0_i32_1 = arith.constant 0 : i32
    return %c0_i32, %c0_i32_0 : i32, i32
  }
  func.func @transform_2(%arg0: i32) -> (i32, i32) {
    %c0_i32 = arith.constant 0 : i32
    %c0_i32_0 = arith.constant 0 : i32
    %c0_i32_1 = arith.constant 0 : i32
    return %c0_i32, %c0_i32_0 : i32, i32
  }
  func.func @transform_3(%arg0: i32) -> (i32, i32) {
    %c0_i32 = arith.constant 0 : i32
    %c0_i32_0 = arith.constant 0 : i32
    %c0_i32_1 = arith.constant 0 : i32
    return %c0_i32, %c0_i32_0 : i32, i32
  }
  func.func @transform_4(%arg0: i32) -> (i32, i32) {
    %c0_i32 = arith.constant 0 : i32
    %c0_i32_0 = arith.constant 0 : i32
    %c0_i32_1 = arith.constant 0 : i32
    return %c0_i32, %c0_i32_0 : i32, i32
  }
  func.func @transform_5(%arg0: i32) -> (i32, i32) {
    %c0_i32 = arith.constant 0 : i32
    %c0_i32_0 = arith.constant 0 : i32
    %c0_i32_1 = arith.constant 0 : i32
    return %c0_i32, %c0_i32_0 : i32, i32
  }
  func.func @transform_6(%arg0: i32) -> (i32, i32) {
    %c0_i32 = arith.constant 0 : i32
    %c0_i32_0 = arith.constant 0 : i32
    %c0_i32_1 = arith.constant 0 : i32
    return %c0_i32, %c0_i32_0 : i32, i32
  }
  func.func @transform_7(%arg0: i32) -> (i32, i32) {
    %c0_i32 = arith.constant 0 : i32
    %c0_i32_0 = arith.constant 0 : i32
    return %arg0, %c0_i32 : i32, i32
  }
}

</mosaic_0001>

<bundles_post_ra>
// kernel: tpu_custom_call.1
= control target key start
LH: loop header
LB: loop body
LE: loop exit
PB: predicated region body
PF: predicated region fallthrough
CT: control target
= control target key end

     0   :  { %12 = vsyncpa [#allocation3], 0  ;;  %s2026_s0 = inlined_call_operand.hbm [shape: f32[32,128], index: 0, kind: input, shape index: {}]   ;;  %s2027_s1 = inlined_call_operand.vmem [shape: bf16[128,256], index: 1, kind: input, shape index: {}]   ;;  %s2028_s2 = inlined_call_operand.hbm [shape: f32[1,256], index: 2, kind: input, shape index: {}]   ;;  %s2029_s3 = inlined_call_operand.vmem [shape: bf16[256,128], index: 3, kind: input, shape index: {}]   ;;  %s2030_s4 = inlined_call_operand.vmem [shape: f32[1,128], index: 4, kind: input, shape index: {}]   ;;  %s2031_s5 = inlined_call_operand.vmem [shape: f32[256,4], index: 5, kind: input, shape index: {}]   ;;  %s2032_s6 = inlined_call_operand.vmem [shape: f32[4,256], index: 6, kind: input, shape index: {}]   ;;  %s2033_s7 = inlined_call_operand.hbm [shape: f32[32,128], index: 7, kind: output, shape index: {}]  }
   0x1   :  { %14 = vsyncpa [#allocation3 + $0x1], 0 }
   0x2   :  { %15 = vsyncpa [#allocation6], 0 }
   0x3   :  { %16 = vsyncpa [#allocation4], 0 }
   0x4   :  { %18 = vsyncpa [#allocation4 + $0x1], 0  ;;  %s1611_s24 = smov 0   ;;  %s1613_s25 = smov 0  }
   0x5   :  { %s1615_s26 = smov 0   ;;  %s1617_s27 = smov 0  }
   0x6 LB: > { %2039 = sst [smem:[#allocation11_spill]] %s1556_s26  ;;  %s1632_s28 = sadd.s32 4294967295, %s1560_s27   ;;  %s1560_s27 = sphi %s1617_s27, %s2060_s27   ;;  %s1556_s26 = sphi %s1615_s26, %s2057_s26   ;;  %s1552_s25 = sphi %s1613_s25, %s2059_s25   ;;  %s1548_s24 = sphi %s1611_s24, %s2058_s24  }
   0x7   : > { %s1165_s29 = sadd.s32 4294967294, %s1560_s27   ;;  %s1636_s30 = sadd.s32 1, %s1560_s27  }
   0x8   : > { %s31_s8 = sadd.s32 1, %s1556_s26  ;;  %s28_s9 = ssub.s32 %s1560_s27, %s1636_s30 }
   0x9   : > { %p38_p0 = scmp.ne.s32.totalorder %s1556_s26, %s1552_s25  ;;  %p29_p1 = scmp.eq.s32.totalorder %s28_s9, 0 }
   0xa   : > { %p39_p2 = scmp.eq.s32.totalorder %s1560_s27, 0  ;;  %p44_p3 = scmp.ne.s32.totalorder %s1552_s25, %s1548_s24 }
   0xb   : > { %p2034_p4 = scmp.eq.s32.totalorder %s1632_s28, 0  ;;  %p194_p7 = scmp.eq.s32.totalorder %s1632_s28, 1 }
   0xc   : > { %s1648_s10 = scalar_select %p29_p1, %s1556_s26, %s31_s8  }
   0xd   : > { %p1650_p5 = por %p39_p2, %p38_p0  ;;  %p1656_p6 = por %p2034_p4, %p44_p3 }
   0xe   : > { %2040 = sst [smem:[#allocation12_spill]] %s1648_s10  ;;  %p200_p8 = scmp.eq.s32.totalorder %s1165_s29, 1 }
   0xf   : > { %s2042_s12 = scalar_select %p1656_p6, 1, 0 }
  0x10   : > { %p1166_p9 = scmp.ge.s32.totalorder %s1560_s27, 1  ;;  %p207_p10 = scmp.lt.s32.totalorder %s1560_s27, 3 }
  0x11   : > { %p1663_p11 = por %p194_p7, %p38_p0  ;;  %p1667_p12 = por %p200_p8, %p44_p3 }
  0x12   : > { %p1671_p13 = pnand %p1166_p9, %p207_p10  ;;  %s1562_s16 = smov [#allocation5]  }
  0x13   : > { %s2043_s13 = scalar_select %p1663_p11, 1, 0 }
  0x14   : > { %s2044_s14 = scalar_select %p1667_p12, 1, 0 }
  0x15   : > { %s2045_s15 = scalar_select %p1671_p13, 1, 0 }
  0x16   : > { %p1330_p2 = pneg %p1671_p13  ;;  %s223_s17 = sshll.u32 %s1562_s16, 4  ;;  %s224_s17 = int_to_ptr.vmem [resolvable:$true] %s223_s17 }
  0x17   : > { %p1343_p4 = scmp.lt.s32.totalorder %s1560_s27, 2  ;;  %p2046_p0 = scmp.eq.s32.totalorder %s1632_s28, 0 }
  0x18   : > { %s246_s19 = sand.u32 1, %s1556_s26   ;;  %s1449_s22 = scalar_lea.vmem %s224_s17, 32 }
  0x19   : > { %p1681_p7 = pnand %p1330_p2, %p2046_p0  ;;  %p1688_p3 = pnand %p1343_p4, %p1650_p5 }
  0x1a   : > { %s1169_s21 = sshll.u32 %s246_s19, 4  ;;  %p1450_p9 = scmp.ne.s32.totalorder %s224_s17, %s1449_s22 }
  0x1b   : > { %p1440_p8 = pneg %p1681_p7  ;;  %p1457_p12 = scmp.lt.s32.totalorder %s224_s17, %s224_s17 }
  0x1c   : > { %p1458_p11 = scmp.lt.s32.totalorder %s1449_s22, %s1449_s22 }
  0x1d   : > { %p1452_p10 = pnand %p1450_p9, %p1440_p8 }
  0x1e   : > { %p1459_p2 = por %p1458_p11, %p1457_p12 }
  0x1f   : > { %p1453_p1 = pneg %p1452_p10 }
  0x21   : > { %p1460_p0 = pnand %p1459_p2, %p1453_p1 }
  0x23   : > { %1463 = shalt.err (!%p1460_p0)
}
  0x24   : > { %1333 = dma.hbm_to_vmem [thread:$0]  (!%p1681_p7), %s2028_s2, 32, %s224_s17, [#allocation6]  }
  0x25   : > { %s1222_s8 = sshll.u32 %s1560_s27, 8  ;;  %s250_s9 = scalar_lea.vmem [#allocation2], %s1169_s21 }
  0x26   : > { %s257_s11 = sshll.u32 %s250_s9, 4  ;;  %s1703_s26 = scalar_lea.hbm %s2026_s0, %s1222_s8  ;;  %s1705_s11 = int_to_ptr.vmem [resolvable:$true] %s257_s11 }
  0x27   : > { %s1707_s18 = scalar_lea.sflag [#allocation3], %s246_s19  ;;  %s1464_s22 = scalar_lea.hbm %s1703_s26, 256 }
  0x28   : > { %p1465_p4 = scmp.ne.s32.totalorder %s1703_s26, %s1464_s22  ;;  %p1466_p5 = pneg %p1688_p3 }
  0x29   : > { %s1469_s23 = scalar_lea.hbm %s2026_s0, 512  ;;  %p1470_p1 = scmp.lt.s32.totalorder %s1703_s26, %s2026_s0 }
  0x2a   : > { %p1467_p11 = pnand %p1466_p5, %p1465_p4  ;;  %p1471_p7 = scmp.lt.s32.totalorder %s1469_s23, %s1464_s22 }
  0x2c   : > { %p1468_p12 = pneg %p1467_p11  ;;  %p1472_p8 = por %p1471_p7, %p1470_p1 }
  0x2e   : > { %p1473_p9 = pnand %p1472_p8, %p1468_p12 }
  0x30   : > { %1476 = shalt.err (!%p1473_p9)
}
  0x31   : > { %s1477_s19 = scalar_lea.vmem %s1705_s11, 256  ;;  %s1563_s8 = smov [#allocation2]  }
  0x32   : > { %p1478_p10 = scmp.ne.s32.totalorder %s1705_s11, %s1477_s19  ;;  %s1482_s9 = sshll.u32 %s1563_s8, 4  ;;  %s1483_s9 = int_to_ptr.vmem [resolvable:$false] %s1482_s9 }
  0x33   : > { %s1484_s16 = scalar_lea.vmem %s1483_s9, 512  ;;  %p1485_p4 = scmp.lt.s32.totalorder %s1705_s11, %s1483_s9 }
  0x34   : > { %p1480_p2 = pnand %p1478_p10, %p1466_p5  ;;  %p1486_p11 = scmp.lt.s32.totalorder %s1484_s16, %s1477_s19 }
  0x36   : > { %p1481_p0 = pneg %p1480_p2  ;;  %p1487_p6 = por %p1486_p11, %p1485_p4 }
  0x38   : > { %p1488_p13 = pnand %p1487_p6, %p1481_p0 }
  0x3a   : > { %1491 = shalt.err (!%p1488_p13)
}
  0x3b   : > { %s1564_s22 = smov 128   ;;  %s1565_s17 = smov 8  }
  0x3c   : > { %1337 = dma.hbm_to_vmem [thread:$0]  (!%p1688_p3), %s1703_s26, 256, %s1705_s11, %s1707_s18, %s1564_s22, %s1564_s22, %s1565_s17  }
  0x3d   : > { %p2049_p5 = scmp.ne.s32.totalorder %s2045_s15, 0 }
  0x3e   : > { %s1731_s21 = sand.u32 (!%p2049_p5), 1, %s1552_s25   ;;  %p2050_p6 = scmp.ne.s32.totalorder (!%p2049_p5), %s2042_s12, 0 }
  0x3f   : > { %269 = sbr.rel (%p2049_p5) target bundleno = 975 (0x3cf), region = 48  ;;  %s1173_s23 = sshll.u32 (!%p2049_p5), %s1731_s21, 4 }
  0x40   : > { %s272_s10 = scalar_lea.sflag (!%p2049_p5), [#allocation3], %s1731_s21  ;;  %s1737_s29 = scalar_lea.vmem (!%p2049_p5), [#allocation2], %s1173_s23 }
  0x44   : > { %1535 = dma.done.wait (%p2050_p6), %s272_s10, 256  }
  0x45   : > { %1537 = vsyncadd (%p2050_p6), %s272_s10, 4294967040  ;;  %p2051_p13 = scmp.eq.s32.totalorder %s1632_s28, 0 }
  0x47   : > { %1539 = dma.done.wait (%p2051_p13), [#allocation6], 32   ;;  %p2052_p3 = pmov %p2051_p13 }
  0x48   : > { %v1566_v0 = vmov 0   ;;  %v1385_v1 = vld [vmem:[%s2027_s1 + $0x74] ss:$8 sps:$4 sm:$0xff]   ;;  %v1387_v2 = vld [vmem:[%s2027_s1 + $0x70] ss:$8 sps:$4 sm:$0xff]   ;;  %v532_v24 = vld [vmem:[%s2031_s5 + $0xe8] sm:$0xff]  ;;  %v334_v52 = vlaneseq }
  0x49   : > { %1541 = vsyncadd (%p2052_p3), [#allocation6], 4294967264  ;;  %456 = vmatprep.mubr.bf16.mxu0 %v1566_v0  ;;  %424 = vmatprep.subr.bf16.mxu0 %v1385_v1  ;;  %v1388_v3 = vld [vmem:[%s2027_s1 + $0x64] ss:$8 sps:$4 sm:$0xff]   ;;  %v1390_v4 = vld [vmem:[%s2027_s1 + $0x60] ss:$8 sps:$4 sm:$0xff]  }
  0x4a   : > { %425 = vmatpush1.bf16.msra.mxu0 %v1387_v2  ;;  %v1391_v5 = vld [vmem:[%s2027_s1 + $0x54] ss:$8 sps:$4 sm:$0xff]   ;;  %v1393_v6 = vld [vmem:[%s2027_s1 + $0x50] ss:$8 sps:$4 sm:$0xff]   ;;  %v1394_v7 = vld [vmem:[%s2027_s1 + $0x44] ss:$8 sps:$4 sm:$0xff]  }
  0x4b   : > { %426 = vmatprep.subr.bf16.mxu0 %v1388_v3  ;;  %v1396_v8 = vld [vmem:[%s2027_s1 + $0x40] ss:$8 sps:$4 sm:$0xff]   ;;  %v1397_v9 = vld [vmem:[%s2027_s1 + $0x34] ss:$8 sps:$4 sm:$0xff]   ;;  %v1399_v10 = vld [vmem:[%s2027_s1 + $0x30] ss:$8 sps:$4 sm:$0xff]  }
  0x4c   : > { %v1400_v11 = vld [vmem:[%s2027_s1 + $0x24] ss:$8 sps:$4 sm:$0xff]   ;;  %v1402_v12 = vld [vmem:[%s2027_s1 + $0x20] ss:$8 sps:$4 sm:$0xff]   ;;  %v1403_v13 = vld [vmem:[%s2027_s1 + $0x14] ss:$8 sps:$4 sm:$0xff]  }
  0x4d   : > { %v1405_v14 = vld [vmem:[%s2027_s1 + $0x10] ss:$8 sps:$4 sm:$0xff]   ;;  %v1406_v15 = vld [vmem:[%s2027_s1 + $0x4] ss:$8 sps:$4 sm:$0xff]   ;;  %v1408_v16 = vld [vmem:[%s2027_s1] ss:$8 sps:$4 sm:$0xff]  }
  0x4e   : > { %427 = vmatpush1.bf16.msra.mxu0 %v1390_v4  ;;  %v313_v17 = vld [vmem:[%s1737_s29] sm:$0xff]  ;;  %v314_v18 = vld [vmem:[%s1737_s29 + $0x8] sm:$0xff]  ;;  %v335_v53 = vshrl.u32 %v334_v52, 7  ;;  %vm713_vm0 = vcmask 1043456   ;;  %vm706_vm1 = vcmask 31744   ;;  %s309_s9 = scalar_lea.vmem [#allocation7], %s1173_s23 }
  0x4f   : > { %428 = vmatprep.subr.bf16.mxu0 %v1391_v5  ;;  %v315_v19 = vpack.c.bf16 %v314_v18, %v313_v17  ;;  %v534_v20 = vld [vmem:[%s2031_s5 + $0xf8] sm:$0xff]  ;;  %v533_v22 = vld [vmem:[%s2031_s5 + $0xf0] sm:$0xff]  ;;  %v516_v25 = vld [vmem:[%s2031_s5 + $0x68] sm:$0xff]  ;;  %s1082_s16 = sshll.u32 %s309_s9, 4  ;;  %s1223_s22 = sshll.u32 %s1632_s28, 8  ;;  %s1978_s16 = int_to_ptr.vmem [resolvable:$true] %s1082_s16 }
  0x50   : > { %1224 = vmatprep.subr.mxu1 %v534_v20  ;;  %v518_v21 = vld [vmem:[%s2031_s5 + $0x78] sm:$0xff]  ;;  %v517_v23 = vld [vmem:[%s2031_s5 + $0x70] sm:$0xff]  ;;  %v531_v26 = vld [vmem:[%s2031_s5 + $0xe0] sm:$0xff]  ;;  %v336_v54 = vsub.s32 0, %v335_v53  ;;  %v340_v56 = vsub.s32 1, %v335_v53  ;;  %s1983_s10 = scalar_lea.hbm %s2033_s7, %s1223_s22  ;;  %s1069_s23 = scalar_lea.sflag [#allocation4], %s1731_s21 }
  0x51   : > { %1225 = vmatpush3.msra.mxu1 %v518_v21  ;;  %v515_v27 = vld [vmem:[%s2031_s5 + $0x60] sm:$0xff]  ;;  %v530_v28 = vld [vmem:[%s2031_s5 + $0xd8] sm:$0xff]  ;;  %v529_v30 = vld [vmem:[%s2031_s5 + $0xd0] sm:$0xff]  ;;  %s1492_s26 = scalar_lea.vmem %s1978_s16, 256  ;;  %p2053_p1 = scmp.ne.s32.totalorder %s2043_s13, 0 }
  0x52   : > { %429 = vmatpush1.bf16.msra.mxu0 %v1393_v6  ;;  %1226 = vmatprep.subr.mxu1 %v533_v22  ;;  %v514_v29 = vld [vmem:[%s2031_s5 + $0x58] sm:$0xff]  ;;  %v513_v31 = vld [vmem:[%s2031_s5 + $0x50] sm:$0xff]  ;;  %v528_v32 = vld [vmem:[%s2031_s5 + $0xc8] sm:$0xff]  ;;  %p1493_p12 = scmp.ne.s32.totalorder %s1978_s16, %s1492_s26  ;;  %s1568_s28 = smov [#allocation7]  }
  0x53   : > { %430 = vmatprep.subr.bf16.mxu0 %v1394_v7  ;;  %1227 = vmatpush3.msra.mxu1 %v517_v23  ;;  %v512_v33 = vld [vmem:[%s2031_s5 + $0x48] sm:$0xff]  ;;  %v527_v34 = vld [vmem:[%s2031_s5 + $0xc0] sm:$0xff]  ;;  %v526_v36 = vld [vmem:[%s2031_s5 + $0xb8] sm:$0xff]  ;;  %s1496_s15 = sshll.u32 %s1568_s28, 4  ;;  %s1497_s15 = int_to_ptr.vmem [resolvable:$false] %s1496_s15 }
  0x54   : > { %1228 = vmatprep.subr.mxu1 %v532_v24  ;;  %v511_v35 = vld [vmem:[%s2031_s5 + $0x40] sm:$0xff]  ;;  %v510_v37 = vld [vmem:[%s2031_s5 + $0x38] sm:$0xff]  ;;  %v525_v38 = vld [vmem:[%s2031_s5 + $0xb0] sm:$0xff]  ;;  %p1494_p7 = pnand %p1493_p12, %p2053_p1  ;;  %s1498_s20 = scalar_lea.vmem %s1497_s15, 512 }
  0x55   : > { %1229 = vmatpush3.msra.mxu1 %v516_v25  ;;  %v509_v39 = vld [vmem:[%s2031_s5 + $0x30] sm:$0xff]  ;;  %v524_v40 = vld [vmem:[%s2031_s5 + $0xa8] sm:$0xff]  ;;  %v523_v42 = vld [vmem:[%s2031_s5 + $0xa0] sm:$0xff]  ;;  %p1499_p9 = scmp.lt.s32.totalorder %s1978_s16, %s1497_s15  ;;  %p1500_p10 = scmp.lt.s32.totalorder %s1498_s20, %s1492_s26 }
  0x56   : > { %431 = vmatpush1.bf16.msra.mxu0 %v1396_v8  ;;  %1230 = vmatprep.subr.mxu1 %v531_v26  ;;  %v508_v41 = vld [vmem:[%s2031_s5 + $0x28] sm:$0xff]  ;;  %v507_v43 = vld [vmem:[%s2031_s5 + $0x20] sm:$0xff]  ;;  %v522_v44 = vld [vmem:[%s2031_s5 + $0x98] sm:$0xff]  ;;  %p1495_p8 = pneg %p1494_p7 }
  0x57   : > { %432 = vmatprep.subr.bf16.mxu0 %v1397_v9  ;;  %1231 = vmatpush3.msra.mxu1 %v515_v27  ;;  %v506_v45 = vld [vmem:[%s2031_s5 + $0x18] sm:$0xff]  ;;  %v521_v46 = vld [vmem:[%s2031_s5 + $0x90] sm:$0xff]  ;;  %v520_v48 = vld [vmem:[%s2031_s5 + $0x88] sm:$0xff]  ;;  %p1501_p2 = por %p1500_p10, %p1499_p9 }
  0x58   : > { %1232 = vmatprep.subr.mxu1 %v530_v28  ;;  %v505_v47 = vld [vmem:[%s2031_s5 + $0x10] sm:$0xff]  ;;  %v504_v49 = vld [vmem:[%s2031_s5 + $0x8] sm:$0xff]  ;;  %v519_v50 = vld [vmem:[%s2031_s5 + $0x80] sm:$0xff] }
  0x59   : > { %1233 = vmatpush3.msra.mxu1 %v514_v29  ;;  %v503_v51 = vld [vmem:[%s2031_s5] sm:$0xff]  ;;  %p1502_p0 = pnand %p1501_p2, %p1495_p8 }
  0x5a   : > { %433 = vmatpush1.bf16.msra.mxu0 %v1399_v10  ;;  %1234 = vmatprep.subr.mxu1 %v529_v30  ;;  %v332_v55 = vld [vmem:[#allocation5] sm:$0x3] }
  0x5b   : > { %434 = vmatprep.subr.bf16.mxu0 %v1400_v11  ;;  %1235 = vmatpush3.msra.mxu1 %v513_v31  ;;  %v337_v57 = vrot.slane %v332_v55, %v336_v54  ;;  %v341_v58 = vrot.slane %v332_v55, %v340_v56 }
  0x5c   : > { %1236 = vmatprep.subr.mxu1 %v528_v32 }
  0x5d   : > { %1237 = vmatpush3.msra.mxu1 %v512_v33 }
  0x5e   : > { %435 = vmatpush1.bf16.msra.mxu0 %v1402_v12  ;;  %1238 = vmatprep.subr.mxu1 %v527_v34 }
  0x5f   : > { %436 = vmatprep.subr.bf16.mxu0 %v1403_v13  ;;  %1239 = vmatpush3.msra.mxu1 %v511_v35 }
  0x60   : > { %1240 = vmatprep.subr.mxu1 %v526_v36 }
  0x61   : > { %1241 = vmatpush3.msra.mxu1 %v510_v37 }
  0x62   : > { %437 = vmatpush1.bf16.msra.mxu0 %v1405_v14  ;;  %1242 = vmatprep.subr.mxu1 %v525_v38 }
  0x63   : > { %438 = vmatprep.subr.bf16.mxu0 %v1406_v15  ;;  %1243 = vmatpush3.msra.mxu1 %v509_v39 }
  0x64   : > { %1244 = vmatprep.subr.mxu1 %v524_v40 }
  0x65   : > { %1245 = vmatpush3.msra.mxu1 %v508_v41 }
  0x66   : > { %439 = vmatpush1.bf16.msra.mxu0 %v1408_v16  ;;  %1246 = vmatprep.subr.mxu1 %v523_v42 }
  0x67   : > { %1262 = vmatprep.subr.mxu0 %v534_v20  ;;  %1247 = vmatpush3.msra.mxu1 %v507_v43 }
  0x68   : > { %1248 = vmatprep.subr.mxu1 %v522_v44 }
  0x69   : > { %457 = vmatmul.mubr.bf16.vlgmr.msra.gmra.mxu0 %v315_v19  ;;  %1249 = vmatpush3.msra.mxu1 %v506_v45 }
  0x6a   : > { %1263 = vmatpush3.msra.mxu0 %v518_v21  ;;  %1250 = vmatprep.subr.mxu1 %v521_v46 }
  0x6b   : > { %1264 = vmatprep.subr.mxu0 %v533_v22  ;;  %1251 = vmatpush3.msra.mxu1 %v505_v47 }
  0x6c   : > { %1265 = vmatpush3.msra.mxu0 %v517_v23  ;;  %1252 = vmatprep.subr.mxu1 %v520_v48 }
  0x6d   : > { %1266 = vmatprep.subr.mxu0 %v532_v24  ;;  %1253 = vmatpush3.msra.mxu1 %v504_v49 }
  0x6e   : > { %1267 = vmatpush3.msra.mxu0 %v516_v25  ;;  %1254 = vmatprep.subr.mxu1 %v519_v50 }
  0x6f   : > { %1268 = vmatprep.subr.mxu0 %v531_v26  ;;  %1255 = vmatpush3.msra.mxu1 %v503_v51 }
  0x70   : > { %1269 = vmatpush3.msra.mxu0 %v515_v27 }
  0x71   : > { %1270 = vmatprep.subr.mxu0 %v530_v28 }
  0x72   : > { %1271 = vmatpush3.msra.mxu0 %v514_v29 }
  0x73   : > { %1272 = vmatprep.subr.mxu0 %v529_v30 }
  0x74   : > { %1273 = vmatpush3.msra.mxu0 %v513_v31 }
  0x75   : > { %1274 = vmatprep.subr.mxu0 %v528_v32 }
  0x76   : > { %1275 = vmatpush3.msra.mxu0 %v512_v33 }
  0x77   : > { %1276 = vmatprep.subr.mxu0 %v527_v34 }
  0x78   : > { %1277 = vmatpush3.msra.mxu0 %v511_v35 }
  0x79   : > { %1278 = vmatprep.subr.mxu0 %v526_v36 }
  0x7a   : > { %1279 = vmatpush3.msra.mxu0 %v510_v37 }
  0x7b   : > { %1280 = vmatprep.subr.mxu0 %v525_v38 }
  0x7c   : > { %1281 = vmatpush3.msra.mxu0 %v509_v39 }
  0x7d   : > { %1282 = vmatprep.subr.mxu0 %v524_v40 }
  0x7e   : > { %1283 = vmatpush3.msra.mxu0 %v508_v41 }
  0x7f   : > { %1284 = vmatprep.subr.mxu0 %v523_v42 }
  0x80   : > { %1285 = vmatpush3.msra.mxu0 %v507_v43  ;;  %v535_v43 = vld [vmem:[%s2032_s6] sm:$0xff] }
  0x81   : > { %1286 = vmatprep.subr.mxu0 %v522_v44  ;;  %v705_v44 = vcombine.high %v535_v43, %v535_v43 }
  0x82   : > { %1287 = vmatpush3.msra.mxu0 %v506_v45  ;;  %v1567_v45 = vmov 0.0  }
  0x83   : > { %1288 = vmatprep.subr.mxu0 %v521_v46  ;;  %1196 = vmatprep.subr.msk.mxu1 %vm713_vm0, %v705_v44  ;;  %v1410_v46 = vld [vmem:[%s2029_s3 + $0x78] sm:$0xff]  }
  0x84   : > { %1289 = vmatpush3.msra.mxu0 %v505_v47 }
  0x85   : > { %1290 = vmatprep.subr.mxu0 %v520_v48 }
  0x86   : > { %1291 = vmatpush3.msra.mxu0 %v504_v49 }
  0x87   : > { %1292 = vmatprep.subr.mxu0 %v519_v50 }
  0x88   : > { %1293 = vmatpush3.msra.mxu0 %v503_v51 }
  0x89   : > { %1192 = vmatprep.subr.msk.mxu0 %vm713_vm0, %v705_v44 }
 0x129   : > { %v458_v59 = vpop.f32.mrf.mxu0 }
 0x12a   : > { %v459_v60 = vadd.f32 %v458_v59, %v337_v57 }
 0x12b   : > { %v460_v61 = vpop.f32.mrf.mxu0 }
 0x12c   : > { %v471_v62 = vmul.f32 0.044715, %v459_v60  ;;  %v461_v63 = vadd.f32 %v460_v61, %v341_v58  ;;  %v467_v26 = vmul.f32 0.5, %v459_v60 }
 0x12d   : > { %v462_v0 = vpop.f32.mrf.mxu0 }
 0x12e   : > { %v475_v1 = vmul.f32 %v471_v62, %v459_v60  ;;  %v472_v2 = vmul.f32 0.044715, %v461_v63  ;;  %v463_v3 = vadd.f32 %v462_v0, %v337_v57  ;;  %v468_v27 = vmul.f32 0.5, %v461_v63 }
 0x12f   : > { %v464_v4 = vpop.f32.mrf.mxu0 }
 0x130   : > { %v476_v5 = vmul.f32 %v472_v2, %v461_v63  ;;  %v473_v6 = vmul.f32 0.044715, %v463_v3  ;;  %v465_v7 = vadd.f32 %v464_v4, %v341_v58  ;;  %v479_v8 = vmul.f32 %v475_v1, %v459_v60 }
 0x131   : > { %v469_v34 = vmul.f32 0.5, %v463_v3 }
 0x132   : > { %v477_v9 = vmul.f32 %v473_v6, %v463_v3  ;;  %v474_v10 = vmul.f32 0.044715, %v465_v7  ;;  %v480_v11 = vmul.f32 %v476_v5, %v461_v63  ;;  %v483_v12 = vadd.f32 %v479_v8, %v459_v60  ;;  %v1411_v8 = vld [vmem:[%s2029_s3 + $0x38] sm:$0xff]  }
 0x133   : > { %v470_v36 = vmul.f32 0.5, %v465_v7 }
 0x134   : > { %v478_v13 = vmul.f32 %v474_v10, %v465_v7  ;;  %v484_v14 = vadd.f32 %v480_v11, %v461_v63  ;;  %v487_v15 = vmul.f32 0.7978845, %v483_v12  ;;  %v481_v16 = vmul.f32 %v477_v9, %v463_v3  ;;  %v1412_v10 = vld [vmem:[%s2029_s3 + $0x70] sm:$0xff]  }
 0x135   : > { %v1413_v12 = vld [vmem:[%s2029_s3 + $0x30] sm:$0xff]  }
 0x136   : > { %v488_v17 = vmul.f32 0.7978845, %v484_v14  ;;  %1426 = vtanh.f32 %v487_v15  ;;  %v482_v18 = vmul.f32 %v478_v13, %v465_v7  ;;  %v485_v19 = vadd.f32 %v481_v16, %v463_v3  ;;  %v1414_v14 = vld [vmem:[%s2029_s3 + $0x68] sm:$0xff]   ;;  %v1416_v16 = vld [vmem:[%s2029_s3 + $0x60] sm:$0xff]  }
 0x137   : > { %v1415_v15 = vld [vmem:[%s2029_s3 + $0x28] sm:$0xff]  }
 0x138   : > { %1428 = vtanh.f32 %v488_v17  ;;  %v486_v20 = vadd.f32 %v482_v18, %v465_v7  ;;  %v489_v21 = vmul.f32 0.7978845, %v485_v19  ;;  %v1417_v17 = vld [vmem:[%s2029_s3 + $0x20] sm:$0xff]   ;;  %v1418_v18 = vld [vmem:[%s2029_s3 + $0x58] sm:$0xff]  }
 0x139   : > { %v1419_v19 = vld [vmem:[%s2029_s3 + $0x18] sm:$0xff]  }
 0x13a   : > { %v490_v22 = vmul.f32 0.7978845, %v486_v20  ;;  %1430 = vtanh.f32 %v489_v21  ;;  %v1420_v20 = vld [vmem:[%s2029_s3 + $0x50] sm:$0xff]  }
 0x13b   : > { %v1421_v21 = vld [vmem:[%s2029_s3 + $0x10] sm:$0xff]  }
 0x13c   : > { %1432 = vtanh.f32 %v490_v22  ;;  %v1422_v22 = vld [vmem:[%s2029_s3 + $0x48] sm:$0xff]  }
 0x143   : > { %v1427_v23 = vpop.eup %1426 }
 0x144   : > { %v495_v24 = vadd.f32 1.0, %v1427_v23  ;;  %v1423_v23 = vld [vmem:[%s2029_s3 + $0x8] sm:$0xff]  }
 0x145   : > { %v1429_v25 = vpop.eup %1428 }
 0x146   : > { %v496_v28 = vadd.f32 1.0, %v1429_v25  ;;  %v1893_v30 = vmul.f32 %v495_v24, %v467_v26  ;;  %v1424_v24 = vld [vmem:[%s2029_s3 + $0x40] sm:$0xff]  }
 0x147   : > { %v1431_v29 = vpop.eup %1430  ;;  %v1425_v25 = vld [vmem:[%s2029_s3] sm:$0xff]  }
 0x148   : > { %v1895_v31 = vmul.f32 %v496_v28, %v468_v27  ;;  %v497_v32 = vadd.f32 1.0, %v1431_v29  ;;  %v611_v38 = vmul.f32 %v1893_v30, %v1893_v30 }
 0x149   : > { %v1433_v33 = vpop.eup %1432 }
 0x14a   : > { %600 = vmatprep.mubr.f32.mxu1 %v1895_v31  ;;  %v612_v35 = vmul.f32 %v1895_v31, %v1895_v31  ;;  %v498_v37 = vadd.f32 1.0, %v1433_v33  ;;  %v1903_v39 = vmul.f32 %v497_v32, %v469_v34 }
 0x14b   : > { %601 = vmatmul.mubr.f32.vlgmr.msra.gmra.mxu1 %v1893_v30 }
 0x14c   : > { %679 = vmatprep.mubr.f32.mxu0 %v612_v35  ;;  %v1905_v40 = vmul.f32 %v498_v37, %v470_v36  ;;  %v613_v42 = vmul.f32 %v1903_v39, %v1903_v39  ;;  %1197 = vmatpush1.msk.msra.mxu1 %vm713_vm0, %v535_v43 }
 0x14d   : > { %680 = vmatmul.mubr.f32.vlgmr.msra.gmra.mxu0 %v611_v38  ;;  %1300 = vmatprep.subr.bf16.mxu1 %v1410_v46 }
 0x14e   : > { %605 = vmatprep.mubr.f32.mxu1 %v1905_v40  ;;  %v614_v41 = vmul.f32 %v1905_v40, %v1905_v40  ;;  %1193 = vmatpush1.msk.msra.mxu0 %vm713_vm0, %v535_v43 }
 0x14f   : > { %606 = vmatmul.mubr.f32.gmra.mxu1 %v1903_v39 }
 0x150   : > { %684 = vmatprep.mubr.f32.mxu0 %v614_v41  ;;  %867 = vmatprep.mubr.f32.mxu1 %v1567_v45 }
 0x151   : > { %685 = vmatmul.mubr.f32.gmra.mxu0 %v613_v42 }
 0x152   : > { %782 = vmatprep.mubr.f32.mxu0 %v1567_v45 }
 0x20b   : > { %v1256_v47 = vpop.f32.mrf.mxu1 }
 0x20d   : > { %v1257_v48 = vpop.f32.mrf.mxu1  ;;  %v1294_v49 = vpop.f32.mrf.mxu0 }
 0x20e   : > { %v1258_v50 = vadd.f32 %v1257_v48, %v1256_v47 }
 0x20f   : > { %v1259_v51 = vpop.f32.mrf.mxu1  ;;  %v1295_v52 = vpop.f32.mrf.mxu0 }
 0x210   : > { %v690_v53 = vmul.f32 0.015625, %v1258_v50  ;;  %v1296_v54 = vadd.f32 %v1295_v52, %v1294_v49 }
 0x211   : > { %v1260_v55 = vpop.f32.mrf.mxu1  ;;  %v1297_v56 = vpop.f32.mrf.mxu0 }
 0x212   : > { %v694_v57 = vmul.f32 %v690_v53, %v690_v53  ;;  %v692_v58 = vmul.f32 0.015625, %v1296_v54  ;;  %v1261_v59 = vadd.f32 %v1260_v55, %v1259_v51 }
 0x213   : > { %v1298_v60 = vpop.f32.mrf.mxu0 }
 0x214   : > { %v696_v61 = vsub.f32 %v692_v58, %v694_v57  ;;  %v691_v62 = vmul.f32 0.015625, %v1261_v59  ;;  %v1299_v63 = vadd.f32 %v1298_v60, %v1297_v56 }
 0x216   : > { %v698_v0 = vmax.f32 %v696_v61, 0.0  ;;  %v695_v1 = vmul.f32 %v691_v62, %v691_v62  ;;  %v693_v2 = vmul.f32 0.015625, %v1299_v63 }
 0x218   : > { %v700_v3 = vadd.f32 1e-05, %v698_v0  ;;  %v697_v4 = vsub.f32 %v693_v2, %v695_v1 }
 0x21a   : > { %1434 = vrsqrt.f32 %v700_v3  ;;  %v699_v5 = vmax.f32 %v697_v4, 0.0 }
 0x21c   : > { %v701_v6 = vadd.f32 1e-05, %v699_v5 }
 0x21e   : > { %1436 = vrsqrt.f32 %v701_v6 }
 0x227   : > { %v1435_v7 = vpop.eup %1434 }
 0x228   : > { %1194 = vmatmul.mubr.msk.f32.vlgmr.msra.gmra.mxu0 %vm706_vm1, %v1435_v7  ;;  %v795_v9 = vmul.f32 %v1435_v7, %v690_v53 }
 0x229   : > { %788 = vmatprep.mubr.f32.mxu0 %v1567_v45 }
 0x22a   : > { %1198 = vmatmul.mubr.msk.f32.vlgmr.msra.gmra.mxu1 %vm706_vm1, %v795_v9 }
 0x22b   : > { %v1437_v11 = vpop.eup %1436  ;;  %873 = vmatprep.mubr.f32.mxu1 %v1567_v45  ;;  %1301 = vmatpush3.bf16.msra.mxu1 %v1411_v8 }
 0x22c   : > { %1195 = vmatmul.mubr.msk.f32.gmra.mxu0 %vm706_vm1, %v1437_v11  ;;  %v796_v13 = vmul.f32 %v1437_v11, %v691_v62  ;;  %1302 = vmatprep.subr.bf16.mxu1 %v1412_v10 }
 0x22e   : > { %1199 = vmatmul.mubr.msk.f32.gmra.mxu1 %vm706_vm1, %v796_v13 }
 0x22f   : > { %1303 = vmatpush3.bf16.msra.mxu1 %v1413_v12 }
 0x230   : > { %1304 = vmatprep.subr.bf16.mxu1 %v1414_v14 }
 0x233   : > { %1305 = vmatpush3.bf16.msra.mxu1 %v1415_v15 }
 0x234   : > { %1306 = vmatprep.subr.bf16.mxu1 %v1416_v16 }
 0x237   : > { %1307 = vmatpush3.bf16.msra.mxu1 %v1417_v17 }
 0x238   : > { %1308 = vmatprep.subr.bf16.mxu1 %v1418_v18 }
 0x23b   : > { %1309 = vmatpush3.bf16.msra.mxu1 %v1419_v19 }
 0x23c   : > { %1310 = vmatprep.subr.bf16.mxu1 %v1420_v20 }
 0x23f   : > { %1311 = vmatpush3.bf16.msra.mxu1 %v1421_v21 }
 0x240   : > { %1312 = vmatprep.subr.bf16.mxu1 %v1422_v22 }
 0x243   : > { %1313 = vmatpush3.bf16.msra.mxu1 %v1423_v23 }
 0x244   : > { %1314 = vmatprep.subr.bf16.mxu1 %v1424_v24 }
 0x247   : > { %1315 = vmatpush3.bf16.msra.mxu1 %v1425_v25 }
 0x2e8   : > { %v784_v26 = vpop.f32.mrf.mxu0 }
 0x2e9   : > { %v880_v35 = vmul.f32 %v784_v26, %v1893_v30  ;;  %v1200_v30 = vld [vmem:[%s2030_s4] ss:$0 sm:$0xff] }
 0x2ea   : > { %v786_v27 = vpop.f32.mrf.mxu0  ;;  %v869_v28 = vpop.f32.mrf.mxu1 }
 0x2eb   : > { %v881_v33 = vmul.f32 %v786_v27, %v1895_v31  ;;  %v884_v45 = vsub.f32 %v880_v35, %v869_v28 }
 0x2ec   : > { %v790_v29 = vpop.f32.mrf.mxu0  ;;  %v871_v32 = vpop.f32.mrf.mxu1 }
 0x2ed   : > { %v882_v34 = vmul.f32 %v790_v29, %v1903_v39  ;;  %v885_v43 = vsub.f32 %v881_v33, %v871_v32 }
 0x2ee   : > { %v792_v36 = vpop.f32.mrf.mxu0  ;;  %v875_v37 = vpop.f32.mrf.mxu1 }
 0x2ef   : > { %v883_v38 = vmul.f32 %v792_v36, %v1905_v40  ;;  %v886_v41 = vsub.f32 %v882_v34, %v875_v37 }
 0x2f0   : > { %v877_v42 = vpop.f32.mrf.mxu1 }
 0x2f1   : > { %v887_v44 = vsub.f32 %v883_v38, %v877_v42  ;;  %v888_v47 = vpack.c.bf16 %v886_v41, %v884_v45 }
 0x2f3   : > { %v889_v46 = vpack.c.bf16 %v887_v44, %v885_v43 }
 0x2f5   : > { %1057 = vmatprep.mubr.bf16.mxu1 %v889_v46 }
 0x2f6   : > { %1058 = vmatmul.mubr.bf16.vlgmr.msra.gmra.mxu1 %v888_v47 }
 0x3b6   : > { %v1316_v31 = vpop.f32.mrf.mxu1 }
 0x3b8   : > { %v1317_v39 = vpop.f32.mrf.mxu1 }
 0x3b9   : > { %v1318_v48 = vadd.f32 %v1317_v39, %v1316_v31 }
 0x3ba   : > { %v1319_v40 = vpop.f32.mrf.mxu1 }
 0x3bb   : > { %v1060_v49 = vadd.f32 %v1318_v48, %v1200_v30 }
 0x3bc   : > { %v1320_v50 = vpop.f32.mrf.mxu1 }
 0x3bd   : > { %1066 = vst [vmem:[%s309_s9] sm:$0xff] %v1060_v49  ;;  %v1321_v51 = vadd.f32 %v1320_v50, %v1319_v40 }
 0x3bf   : > { %v1063_v52 = vadd.f32 %v1321_v51, %v1200_v30 }
 0x3c1   : > { %1067 = vst [vmem:[%s309_s9 + $0x8] sm:$0xff] %v1063_v52 }
 0x3c2   : > { %1505 = shalt.err (!%p1502_p0)
}
 0x3c3   : > { %s1506_s11 = scalar_lea.hbm %s1983_s10, 256  ;;  %s1510_s19 = scalar_lea.hbm %s2033_s7, 512 }
 0x3c4   : > { %p1507_p4 = scmp.ne.s32.totalorder %s1983_s10, %s1506_s11  ;;  %p1511_p6 = scmp.lt.s32.totalorder %s1983_s10, %s2033_s7 }
 0x3c5   : > { %p1512_p13 = scmp.lt.s32.totalorder %s1510_s19, %s1506_s11 }
 0x3c6   : > { %p1508_p11 = pnand %p1507_p4, %p2053_p1 }
 0x3c7   : > { %p1513_p3 = por %p1512_p13, %p1511_p6 }
 0x3c8   : > { %p1509_p5 = pneg %p1508_p11 }
 0x3ca   : > { %p1514_p12 = pnand %p1513_p3, %p1509_p5 }
 0x3cc   : > { %1517 = shalt.err (!%p1514_p12)
}
 0x3cd   : > { %s1569_s22 = smov 128   ;;  %s1570_s17 = smov 8  }
 0x3ce   : > { %1328 = dma.vmem_to_hbm [thread:$0]  (%p2053_p1), %s1978_s16, 256, %s1983_s10, %s1069_s23, %s1569_s22, %s1569_s22, %s1570_s17  }
 0x3cf PF: > { %s1097_s29 = sand.u32 1, %s1548_s24   ;;  %p2054_p7 = scmp.ne.s32.totalorder %s2044_s14, 0 }
 0x3d0   : > { %p2055_p8 = scmp.ge.s32.totalorder %s1560_s27, 2  ;;  %s1098_s26 = scalar_lea.sflag [#allocation4], %s1097_s29 }
 0x3d2   : > { %p1339_p9 = pnand %p2055_p8, %p2054_p7 }
 0x3d4   : > { %p1340_p10 = pneg %p1339_p9 }
 0x3d6   : > { %1543 = dma.done.wait (%p1340_p10), %s1098_s26, 256  }
 0x3d7   : > { %1545 = vsyncadd (%p1340_p10), %s1098_s26, 4294967040  ;;  %s2056_s28 = sld [smem:[#allocation11_spill]]  ;;  %p21_p2 = scmp.ge.s32.totalorder %s1636_s30, 4  }
 0x3d8   : > { %s2057_s26 = sld [smem:[#allocation12_spill]]  ;;  %s2058_s24 = smov %s1552_s25 }
 0x3d9   : > { %s2060_s27 = smov %s1636_s30  ;;  %23 = sbr.rel (!%p21_p2) target bundleno = 6 (0x6), region = 97 }
 0x3dd   : > { %s2059_s25 = smov %s2056_s28 }
 0x3de   :  { %1103 = vsyncpa [#allocation3], 1 }
 0x3df   :  { %1105 = vsyncpa [#allocation3 + $0x1], 1 }
 0x3e0   :  { %1106 = vsyncpa [#allocation6], 1 }
 0x3e1   :  { %1107 = vsyncpa [#allocation4], 1 }
 0x3e2   :  { %1109 = vsyncpa [#allocation4 + $0x1], 1 }

</bundles_post_ra>
